<compile_context>
chip_gen: v7x
topology: tpu7x:2x2x1
jax: 0.10.0
libtpu: 0.0.40
codegen_flags: <defaults>
</compile_context>

<pallas_src>
import functools

import jax
import jax.numpy as jnp
from jax import lax
from jax.experimental import pallas as pl
from jax.experimental.pallas import tpu as pltpu

_LANE = 128


def _ohem_bce_kernel(pred_ref, tgt_ref, out_ref,
                     lsum_ref, thr_ref, msum_ref, mcnt_ref,
                     *, m_true, m_pad, tile_r, lane):
    """Grid = (B, 2, T). pass 0: per-example loss sum; pass 1: OHEM-masked sum."""
    p = pl.program_id(1)                       # pass index (0: threshold, 1: select)
    t = pl.program_id(2)                       # tile index within the example
    nt = pl.num_programs(2)

    # Elementwise BCE for this (tile_r, lane) tile (recomputed on both passes;
    # the kernel is HBM-bound so the extra VPU/EUP work is hidden).
    x = pred_ref[0].astype(jnp.float32)        # (tile_r, lane)
    y = tgt_ref[0].astype(jnp.float32)
    log_x = jnp.maximum(jnp.log(x), -100.0)        # PyTorch BCELoss log clamp
    log_1mx = jnp.maximum(jnp.log(1.0 - x), -100.0)
    loss = -(y * log_x + (1.0 - y) * log_1mx)      # (tile_r, lane), >= 0

    if m_pad > m_true:
        # Mask padded tail elements (static branch: compiled out when unneeded).
        # Padding values are chosen so padded loss == 0 anyway; this is cheap
        # VPU filler hidden under the HBM stream, kept as insurance.
        rows = lax.broadcasted_iota(jnp.int32, (tile_r, lane), 0) + t * tile_r
        lanes = lax.broadcasted_iota(jnp.int32, (tile_r, lane), 1)
        valid = ((rows * lane + lanes) < m_true).astype(jnp.float32)
        loss = loss * valid
    else:
        valid = None

    @pl.when(jnp.logical_and(p == 0, t == 0))
    def _init():
        lsum_ref[...] = jnp.zeros_like(lsum_ref)

    @pl.when(p == 0)
    def _pass0():
        # Per-lane partial sums (better f32 accumulation than a single scalar).
        lsum_ref[...] += jnp.sum(loss, axis=0, keepdims=True)

    @pl.when(jnp.logical_and(p == 0, t == nt - 1))
    def _threshold():
        thr = jnp.sum(lsum_ref[...]) / jnp.float32(m_true)   # per-example mean
        thr_ref[...] = jnp.zeros_like(thr_ref) + thr
        msum_ref[...] = jnp.zeros_like(msum_ref)
        mcnt_ref[...] = jnp.zeros_like(mcnt_ref)

    @pl.when(p == 1)
    def _pass1():
        thr = thr_ref[...]                                   # (1, lane), broadcast
        hard = (loss > thr).astype(jnp.float32)
        if valid is not None:
            hard = hard * valid
        msum_ref[...] += jnp.sum(loss * hard, axis=0, keepdims=True)
        mcnt_ref[...] += jnp.sum(hard, axis=0, keepdims=True)

    @pl.when(jnp.logical_and(p == 1, t == nt - 1))
    def _finalize():
        s = jnp.sum(msum_ref[...])
        c = jnp.sum(mcnt_ref[...])
        out_ref[...] = jnp.zeros_like(out_ref) + s / c       # per-example loss


@functools.partial(jax.jit, static_argnames=("max_tile_rows",))
def adaptive_ohem_bce_per_example(pred, target, *, max_tile_rows=8192):
    """JAX/Pallas equivalent of AdaptiveOhemCrossEntropyPerExample.forward."""
    assert max_tile_rows % 8 == 0
    B, C, H, W = target.shape

    if pred.shape[2] != H or pred.shape[3] != W:
        # TODO(synk): F.upsample(mode='bilinear') align_corners default differs across
        # PyTorch versions; jax.image.resize matches align_corners=False.
        pred = jax.image.resize(pred, (pred.shape[0], pred.shape[1], H, W),
                                method="bilinear")

    M = C * H * W                                   # elements per example
    R = -(-M // _LANE)                              # 128-lane rows needed
    R8 = -(-R // 8) * 8                             # rounded to sublane multiple
    T = -(-R8 // max_tile_rows)                     # tiles per example
    tile_r = -(-(-(-R8 // T)) // 8) * 8             # ceil(R8/T), multiple of 8
    Rp = T * tile_r                                 # padded rows (<= R8 + 8*T)
    Mp = Rp * _LANE

    # Pure reshape (no transpose) of NCHW -> (B, rows, 128); pad ragged tail with
    # (pred=1, target=1) which yields an exact-zero BCE loss.
    pred_f = pred.reshape(B, M)
    tgt_f = target.reshape(B, M)
    if Mp > M:
        pad = Mp - M
        pred_f = jnp.pad(pred_f, ((0, 0), (0, pad)), constant_values=1.0)
        tgt_f = jnp.pad(tgt_f, ((0, 0), (0, pad)), constant_values=1.0)
    pred_3d = pred_f.reshape(B, Rp, _LANE)
    tgt_3d = tgt_f.reshape(B, Rp, _LANE)

    kernel = functools.partial(_ohem_bce_kernel, m_true=M, m_pad=Mp,
                               tile_r=tile_r, lane=_LANE)

    out = pl.pallas_call(
        kernel,
        out_shape=jax.ShapeDtypeStruct((B, 8, _LANE), jnp.float32),
        grid_spec=pltpu.PrefetchScalarGridSpec(
            num_scalar_prefetch=0,
            grid=(B, 2, T),
            in_specs=[
                pl.BlockSpec((1, tile_r, _LANE), lambda b, p, t: (b, t, 0)),
                pl.BlockSpec((1, tile_r, _LANE), lambda b, p, t: (b, t, 0)),
            ],
            out_specs=pl.BlockSpec((1, 8, _LANE), lambda b, p, t: (b, 0, 0)),
            scratch_shapes=[
                pltpu.VMEM((1, _LANE), jnp.float32),   # loss-sum accumulator
                pltpu.VMEM((1, _LANE), jnp.float32),   # broadcast threshold
                pltpu.VMEM((1, _LANE), jnp.float32),   # masked-sum accumulator
                pltpu.VMEM((1, _LANE), jnp.float32),   # mask-count accumulator
            ],
        ),
        compiler_params=pltpu.CompilerParams(
            # B axis parallel -> v7x megacore splits examples across its 2 TCs.
            dimension_semantics=("parallel", "arbitrary", "arbitrary"),
            # Raise v5e's 16 MiB default so 4 MiB double-buffered blocks fit;
            # still well inside v7x's 64 MiB physical VMEM.
            vmem_limit_bytes=32 * 1024 * 1024,
        ),
    )(pred_3d, tgt_3d)

    return out[:, 0, 0]                              # (B,) per-example losses


class AdaptiveOhemCrossEntropyPerExample:
    """JAX mirror of the PyTorch module."""

    def __init__(self):
        self.min_kept = 1   # kept for parity; unused in forward (as in PyTorch)

    def __call__(self, pred, target, **kwargs):
        return adaptive_ohem_bce_per_example(pred, target)


if __name__ == "__main__":
    key = jax.random.PRNGKey(0)
    k1, k2 = jax.random.split(key)

    B, C, H, W = 2, 4, 16, 16
    pred = jax.nn.sigmoid(jax.random.normal(k1, (B, C, H, W), dtype=jnp.float32))
    target = jax.random.uniform(k2, (B, C, H, W), dtype=jnp.float32)

    module = AdaptiveOhemCrossEntropyPerExample()
    loss = jax.block_until_ready(module(pred, target))

    # Pure-JAX reference of the PyTorch forward.
    log_p = jnp.maximum(jnp.log(pred), -100.0)
    log_1mp = jnp.maximum(jnp.log(1.0 - pred), -100.0)
    bce = -(target * log_p + (1.0 - target) * log_1mp)
    thr = bce.mean(axis=(1, 2, 3), keepdims=True)
    hard = (bce > thr).astype(jnp.float32)
    ref = (bce * hard).sum(axis=(1, 2, 3)) / hard.sum(axis=(1, 2, 3))

    assert loss.shape == (B,), loss.shape
    assert jnp.allclose(loss, ref, atol=1e-5, rtol=1e-5), (loss, ref)

    print("KERNEL_OK")
</pallas_src>

<mosaic_0001>
module attributes {stable_mosaic.version = 11 : i64} {
  func.func @_ohem_bce_kernel(%arg0: i32, %arg1: i32, %arg2: i32, %arg3: memref<1x8x128xf32, #tpu.memory_space<vmem>>, %arg4: memref<1x8x128xf32, #tpu.memory_space<vmem>>, %arg5: memref<1x8x128xf32, #tpu.memory_space<vmem>>, %arg6: memref<1x128xf32, #tpu.memory_space<vmem>>, %arg7: memref<1x128xf32, #tpu.memory_space<vmem>>, %arg8: memref<1x128xf32, #tpu.memory_space<vmem>>, %arg9: memref<1x128xf32, #tpu.memory_space<vmem>>) attributes {dimension_semantics = [#tpu.dimension_semantics<parallel>, #tpu.dimension_semantics<arbitrary>, #tpu.dimension_semantics<arbitrary>], iteration_bounds = array<i64: 2, 2, 1>, scalar_prefetch = 0 : i64, scratch_operands = 4 : i64, tpu.core_type = #tpu.core_type<tc>, window_params = [{transform_indices = @transform_0, window_bounds = array<i64: 1, 8, 128>}, {transform_indices = @transform_1, window_bounds = array<i64: 1, 8, 128>}, {transform_indices = @transform_2, window_bounds = array<i64: 1, 8, 128>}]} {
    %c0 = arith.constant 0 : index
    %c0_0 = arith.constant 0 : index
    %c0_1 = arith.constant 0 : index
    %0 = vector.load %arg3[%c0, %c0_0, %c0_1] : memref<1x8x128xf32, #tpu.memory_space<vmem>>, vector<1x8x128xf32>
    %1 = vector.shape_cast %0 : vector<1x8x128xf32> to vector<8x128xf32>
    %c0_2 = arith.constant 0 : index
    %c0_3 = arith.constant 0 : index
    %c0_4 = arith.constant 0 : index
    %2 = vector.load %arg4[%c0_2, %c0_3, %c0_4] : memref<1x8x128xf32, #tpu.memory_space<vmem>>, vector<1x8x128xf32>
    %3 = vector.shape_cast %2 : vector<1x8x128xf32> to vector<8x128xf32>
    %4 = math.log %1 : vector<8x128xf32>
    %cst = arith.constant -1.000000e+02 : f32
    %5 = vector.broadcast %cst : f32 to vector<8x128xf32>
    %6 = arith.maximumf %4, %5 : vector<8x128xf32>
    %cst_5 = arith.constant 1.000000e+00 : f32
    %7 = vector.broadcast %cst_5 : f32 to vector<8x128xf32>
    %8 = arith.subf %7, %1 : vector<8x128xf32>
    %9 = math.log %8 : vector<8x128xf32>
    %cst_6 = arith.constant -1.000000e+02 : f32
    %10 = vector.broadcast %cst_6 : f32 to vector<8x128xf32>
    %11 = arith.maximumf %9, %10 : vector<8x128xf32>
    %12 = arith.mulf %3, %6 : vector<8x128xf32>
    %cst_7 = arith.constant 1.000000e+00 : f32
    %13 = vector.broadcast %cst_7 : f32 to vector<8x128xf32>
    %14 = arith.subf %13, %3 : vector<8x128xf32>
    %15 = arith.mulf %14, %11 : vector<8x128xf32>
    %16 = arith.addf %12, %15 : vector<8x128xf32>
    %cst_8 = arith.constant 0.000000e+00 : f32
    %17 = vector.broadcast %cst_8 : f32 to vector<8x128xf32>
    %18 = arith.subf %17, %16 : vector<8x128xf32>
    %c0_i32 = arith.constant 0 : i32
    %19 = arith.cmpi eq, %arg1, %c0_i32 : i32
    %c0_i32_9 = arith.constant 0 : i32
    %20 = arith.cmpi eq, %arg2, %c0_i32_9 : i32
    %21 = arith.andi %19, %20 : i1
    %22 = arith.extui %21 : i1 to i32
    %c0_i32_10 = arith.constant 0 : i32
    %23 = arith.cmpi ne, %22, %c0_i32_10 : i32
    scf.if %23 {
      %cst_20 = arith.constant 0.000000e+00 : f32
      %40 = vector.broadcast %cst_20 : f32 to vector<1x128xf32>
      %c0_21 = arith.constant 0 : index
      %c0_22 = arith.constant 0 : index
      %41 = vector.load %arg6[%c0_21, %c0_22] : memref<1x128xf32, #tpu.memory_space<vmem>>, vector<1x128xf32>
      tpu.vector_store %arg6[%c0_21, %c0_22], %40 {strides = array<i32>} : memref<1x128xf32, #tpu.memory_space<vmem>>, vector<1x128xf32>,
    } else {
    }
    %c0_i32_11 = arith.constant 0 : i32
    %24 = arith.cmpi eq, %arg1, %c0_i32_11 : i32
    %25 = arith.extui %24 : i1 to i32
    %c0_i32_12 = arith.constant 0 : i32
    %26 = arith.cmpi ne, %25, %c0_i32_12 : i32
    scf.if %26 {
      %c0_20 = arith.constant 0 : index
      %c0_21 = arith.constant 0 : index
      %40 = vector.load %arg6[%c0_20, %c0_21] : memref<1x128xf32, #tpu.memory_space<vmem>>, vector<1x128xf32>
      %cst_22 = arith.constant dense<0.000000e+00> : vector<128xf32>
      %41 = vector.multi_reduction <add>, %18, %cst_22 [0] : vector<8x128xf32> to vector<128xf32>
      %42 = vector.shape_cast %41 : vector<128xf32> to vector<1x128xf32>
      %43 = arith.addf %40, %42 : vector<1x128xf32>
      %c0_23 = arith.constant 0 : index
      %c0_24 = arith.constant 0 : index
      %44 = vector.load %arg6[%c0_23, %c0_24] : memref<1x128xf32, #tpu.memory_space<vmem>>, vector<1x128xf32>
      tpu.vector_store %arg6[%c0_23, %c0_24], %43 {strides = array<i32>} : memref<1x128xf32, #tpu.memory_space<vmem>>, vector<1x128xf32>,
    } else {
    }
    %c0_i32_13 = arith.constant 0 : i32
    %27 = arith.cmpi eq, %arg1, %c0_i32_13 : i32
    %c0_i32_14 = arith.constant 0 : i32
    %28 = arith.cmpi eq, %arg2, %c0_i32_14 : i32
    %29 = arith.andi %27, %28 : i1
    %30 = arith.extui %29 : i1 to i32
    %c0_i32_15 = arith.constant 0 : i32
    %31 = arith.cmpi ne, %30, %c0_i32_15 : i32
    scf.if %31 {
      %c0_20 = arith.constant 0 : index
      %c0_21 = arith.constant 0 : index
      %40 = vector.load %arg6[%c0_20, %c0_21] : memref<1x128xf32, #tpu.memory_space<vmem>>, vector<1x128xf32>
      %41 = vector.shape_cast %40 : vector<1x128xf32> to vector<1x1x128xf32>
      %cst_22 = arith.constant dense<0.000000e+00> : vector<1xf32>
      %42 = vector.multi_reduction <add>, %41, %cst_22 [1, 2] : vector<1x1x128xf32> to vector<1xf32>
      %43 = vector.shape_cast %42 : vector<1xf32> to vector<1x1x1xf32>
      %44 = vector.extract %43[0, 0, 0] : f32 from vector<1x1x1xf32>
      %cst_23 = arith.constant 1.024000e+03 : f32
      %45 = arith.divf %44, %cst_23 : f32
      %cst_24 = arith.constant 0.000000e+00 : f32
      %46 = vector.broadcast %cst_24 : f32 to vector<1x128xf32>
      %47 = vector.broadcast %45 : f32 to vector<1x128xf32>
      %48 = arith.addf %46, %47 : vector<1x128xf32>
      %c0_25 = arith.constant 0 : index
      %c0_26 = arith.constant 0 : index
      %49 = vector.load %arg7[%c0_25, %c0_26] : memref<1x128xf32, #tpu.memory_space<vmem>>, vector<1x128xf32>
      tpu.vector_store %arg7[%c0_25, %c0_26], %48 {strides = array<i32>} : memref<1x128xf32, #tpu.memory_space<vmem>>, vector<1x128xf32>,
      %cst_27 = arith.constant 0.000000e+00 : f32
      %50 = vector.broadcast %cst_27 : f32 to vector<1x128xf32>
      %c0_28 = arith.constant 0 : index
      %c0_29 = arith.constant 0 : index
      %51 = vector.load %arg8[%c0_28, %c0_29] : memref<1x128xf32, #tpu.memory_space<vmem>>, vector<1x128xf32>
      tpu.vector_store %arg8[%c0_28, %c0_29], %50 {strides = array<i32>} : memref<1x128xf32, #tpu.memory_space<vmem>>, vector<1x128xf32>,
      %cst_30 = arith.constant 0.000000e+00 : f32
      %52 = vector.broadcast %cst_30 : f32 to vector<1x128xf32>
      %c0_31 = arith.constant 0 : index
      %c0_32 = arith.constant 0 : index
      %53 = vector.load %arg9[%c0_31, %c0_32] : memref<1x128xf32, #tpu.memory_space<vmem>>, vector<1x128xf32>
      tpu.vector_store %arg9[%c0_31, %c0_32], %52 {strides = array<i32>} : memref<1x128xf32, #tpu.memory_space<vmem>>, vector<1x128xf32>,
    } else {
    }
    %c1_i32 = arith.constant 1 : i32
    %32 = arith.cmpi eq, %arg1, %c1_i32 : i32
    %33 = arith.extui %32 : i1 to i32
    %c0_i32_16 = arith.constant 0 : i32
    %34 = arith.cmpi ne, %33, %c0_i32_16 : i32
    scf.if %34 {
      %c0_20 = arith.constant 0 : index
      %c0_21 = arith.constant 0 : index
      %40 = vector.load %arg7[%c0_20, %c0_21] : memref<1x128xf32, #tpu.memory_space<vmem>>, vector<1x128xf32>
      %41 = vector.broadcast %40 : vector<1x128xf32> to vector<8x128xf32>
      %42 = arith.cmpf ogt, %18, %41 : vector<8x128xf32>
      %43 = arith.extui %42 : vector<8x128xi1> to vector<8x128xi32>
      %44 = arith.sitofp %43 : vector<8x128xi32> to vector<8x128xf32>
      %c0_22 = arith.constant 0 : index
      %c0_23 = arith.constant 0 : index
      %45 = vector.load %arg8[%c0_22, %c0_23] : memref<1x128xf32, #tpu.memory_space<vmem>>, vector<1x128xf32>
      %46 = arith.mulf %18, %44 : vector<8x128xf32>
      %cst_24 = arith.constant dense<0.000000e+00> : vector<128xf32>
      %47 = vector.multi_reduction <add>, %46, %cst_24 [0] : vector<8x128xf32> to vector<128xf32>
      %48 = vector.shape_cast %47 : vector<128xf32> to vector<1x128xf32>
      %49 = arith.addf %45, %48 : vector<1x128xf32>
      %c0_25 = arith.constant 0 : index
      %c0_26 = arith.constant 0 : index
      %50 = vector.load %arg8[%c0_25, %c0_26] : memref<1x128xf32, #tpu.memory_space<vmem>>, vector<1x128xf32>
      tpu.vector_store %arg8[%c0_25, %c0_26], %49 {strides = array<i32>} : memref<1x128xf32, #tpu.memory_space<vmem>>, vector<1x128xf32>,
      %c0_27 = arith.constant 0 : index
      %c0_28 = arith.constant 0 : index
      %51 = vector.load %arg9[%c0_27, %c0_28] : memref<1x128xf32, #tpu.memory_space<vmem>>, vector<1x128xf32>
      %cst_29 = arith.constant dense<0.000000e+00> : vector<128xf32>
      %52 = vector.multi_reduction <add>, %44, %cst_29 [0] : vector<8x128xf32> to vector<128xf32>
      %53 = vector.shape_cast %52 : vector<128xf32> to vector<1x128xf32>
      %54 = arith.addf %51, %53 : vector<1x128xf32>
      %c0_30 = arith.constant 0 : index
      %c0_31 = arith.constant 0 : index
      %55 = vector.load %arg9[%c0_30, %c0_31] : memref<1x128xf32, #tpu.memory_space<vmem>>, vector<1x128xf32>
      tpu.vector_store %arg9[%c0_30, %c0_31], %54 {strides = array<i32>} : memref<1x128xf32, #tpu.memory_space<vmem>>, vector<1x128xf32>,
    } else {
    }
    %c1_i32_17 = arith.constant 1 : i32
    %35 = arith.cmpi eq, %arg1, %c1_i32_17 : i32
    %c0_i32_18 = arith.constant 0 : i32
    %36 = arith.cmpi eq, %arg2, %c0_i32_18 : i32
    %37 = arith.andi %35, %36 : i1
    %38 = arith.extui %37 : i1 to i32
    %c0_i32_19 = arith.constant 0 : i32
    %39 = arith.cmpi ne, %38, %c0_i32_19 : i32
    scf.if %39 {
      %c0_20 = arith.constant 0 : index
      %c0_21 = arith.constant 0 : index
      %40 = vector.load %arg8[%c0_20, %c0_21] : memref<1x128xf32, #tpu.memory_space<vmem>>, vector<1x128xf32>
      %41 = vector.shape_cast %40 : vector<1x128xf32> to vector<1x1x128xf32>
      %cst_22 = arith.constant dense<0.000000e+00> : vector<1xf32>
      %42 = vector.multi_reduction <add>, %41, %cst_22 [1, 2] : vector<1x1x128xf32> to vector<1xf32>
      %43 = vector.shape_cast %42 : vector<1xf32> to vector<1x1x1xf32>
      %44 = vector.extract %43[0, 0, 0] : f32 from vector<1x1x1xf32>
      %c0_23 = arith.constant 0 : index
      %c0_24 = arith.constant 0 : index
      %45 = vector.load %arg9[%c0_23, %c0_24] : memref<1x128xf32, #tpu.memory_space<vmem>>, vector<1x128xf32>
      %46 = vector.shape_cast %45 : vector<1x128xf32> to vector<1x1x128xf32>
      %cst_25 = arith.constant dense<0.000000e+00> : vector<1xf32>
      %47 = vector.multi_reduction <add>, %46, %cst_25 [1, 2] : vector<1x1x128xf32> to vector<1xf32>
      %48 = vector.shape_cast %47 : vector<1xf32> to vector<1x1x1xf32>
      %49 = vector.extract %48[0, 0, 0] : f32 from vector<1x1x1xf32>
      %cst_26 = arith.constant 0.000000e+00 : f32
      %50 = vector.broadcast %cst_26 : f32 to vector<1x8x128xf32>
      %51 = arith.divf %44, %49 : f32
      %52 = vector.broadcast %51 : f32 to vector<1x8x128xf32>
      %53 = arith.addf %50, %52 : vector<1x8x128xf32>
      %c0_27 = arith.constant 0 : index
      %c0_28 = arith.constant 0 : index
      %c0_29 = arith.constant 0 : index
      %54 = vector.load %arg5[%c0_27, %c0_28, %c0_29] : memref<1x8x128xf32, #tpu.memory_space<vmem>>, vector<1x8x128xf32>
      tpu.vector_store %arg5[%c0_27, %c0_28, %c0_29], %53 {strides = array<i32>} : memref<1x8x128xf32, #tpu.memory_space<vmem>>, vector<1x8x128xf32>,
    } else {
    }
    return
  }
  func.func @transform_0(%arg0: i32, %arg1: i32, %arg2: i32) -> (i32, i32, i32) {
    %c0_i32 = arith.constant 0 : i32
    %c0_i32_0 = arith.constant 0 : i32
    return %arg0, %arg2, %c0_i32 : i32, i32, i32
  }
  func.func @transform_1(%arg0: i32, %arg1: i32, %arg2: i32) -> (i32, i32, i32) {
    %c0_i32 = arith.constant 0 : i32
    %c0_i32_0 = arith.constant 0 : i32
    return %arg0, %arg2, %c0_i32 : i32, i32, i32
  }
  func.func @transform_2(%arg0: i32, %arg1: i32, %arg2: i32) -> (i32, i32, i32) {
    %c0_i32 = arith.constant 0 : i32
    %c0_i32_0 = arith.constant 0 : i32
    %c0_i32_1 = arith.constant 0 : i32
    return %arg0, %c0_i32, %c0_i32_0 : i32, i32, i32
  }
}

</mosaic_0001>

<bundles_post_ra>
// kernel: adaptive_ohem_bce_per_example.1
= control target key start
LH: loop header
LB: loop body
LE: loop exit
PB: predicated region body
PF: predicated region fallthrough
CT: control target
= control target key end

     0   :  { %s537_s9 = smov 0   ;;  %s539_s10 = smov 0   ;;  %s613_s0 = inlined_call_operand.vmem [shape: f32[2,8,128], index: 0, kind: input, shape index: {}]   ;;  %s614_s1 = inlined_call_operand.vmem [shape: f32[2,8,128], index: 1, kind: input, shape index: {}]   ;;  %s615_s2 = inlined_call_operand.vmem [shape: f32[2,8,128], index: 2, kind: output, shape index: {}]  }
   0x1   :  { %s541_s11 = smov 0   ;;  %s543_s12 = smov 0  }
   0x2   :  { %s545_s13 = smov 0  }
   0x3 LB: > { %s27_s14 = sadd.s32 1, %s509_s11  ;;  %s31_s15 = sadd.s32 1, %s513_s12  ;;  %s517_s13 = sphi %s545_s13, %s12_s13   ;;  %s513_s12 = sphi %s543_s12, %s619_s12   ;;  %s509_s11 = sphi %s541_s11, %s618_s11   ;;  %s505_s10 = sphi %s539_s10, %s617_s10   ;;  %s501_s9 = sphi %s537_s9, %s616_s9  }
   0x4   : > { %p29_p0 = scmp.ge.s32.totalorder %s27_s14, 2  ;;  %p408_p1 = scmp.ge.s32.totalorder %s517_s13, 1 }
   0x5   : > { %p149_p2 = scmp.lt.s32.totalorder %s517_s13, 5 }
   0x6   : > { %s621_s14 = smov (%p29_p0, %s27_s14), 0  ;;  %s623_s15 = smov (!%p29_p0, %s31_s15), %s513_s12 }
   0x7   : > { %p150_p3 = pnand %p408_p1, %p149_p2  ;;  %p33_p4 = scmp.ge.s32.totalorder %s623_s15, 2 }
   0x8   : > { %p179_p5 = scmp.lt.s32.totalorder (!%p150_p3), %s505_s10, 1  ;;  %p211_p6 = scmp.eq.s32.totalorder (!%p150_p3), %s501_s9, 0 }
   0x9   : > { %s625_s15 = smov (%p33_p4, %s623_s15), 0  ;;  %153 = sbr.rel (%p150_p3) target bundleno = 582 (0x246), region = 28 }
  0x10   : > { %s627_s10 = smov (!%p179_p5, %s505_s10), 1  ;;  %v519_v14 = vmov (%p211_p6), 0.0  }
  0x11   : > { %s570_s16 = sshll.u32 %s627_s10, 3  ;;  %217 = vst [vmem:[#allocation2] sm:$0x1] (%p211_p6), %v519_v14 }
  0x12   : > { %s185_s19 = scalar_lea.vmem %s613_s0, %s570_s16  ;;  %s196_s22 = scalar_lea.vmem %s615_s2, %s570_s16 }
  0x13   : > { %v197_v0 = vld [vmem:[%s185_s19] sm:$0xff]  ;;  %s192_s25 = scalar_lea.vmem %s614_s1, %s570_s16 }
  0x14   : > { %473 = vlog2.f32 %v197_v0  ;;  %v202_v1 = vsub.f32 1.0, %v197_v0  ;;  %v198_v3 = vld [vmem:[%s192_s25] sm:$0xff] }
  0x15   : > { %v207_v8 = vsub.f32 1.0, %v198_v3 }
  0x16   : > { %475 = vlog2.f32 %v202_v1 }
  0x1e   : > { %v474_v2 = vpop.eup %473 }
  0x1f   : > { %v200_v4 = vmul.f32 0.6931472, %v474_v2 }
  0x20   : > { %v476_v5 = vpop.eup %475 }
  0x21   : > { %v201_v6 = vmax.f32 %v200_v4, -100.0  ;;  %v204_v7 = vmul.f32 0.6931472, %v476_v5 }
  0x23   : > { %v205_v9 = vmax.f32 %v204_v7, -100.0  ;;  %v206_v10 = vmul.f32 %v201_v6, %v198_v3  ;;  %216 = sbr.rel (!%p211_p6) target bundleno = 42 (0x2a), region = 32 }
  0x25   : > { %v208_v11 = vmul.f32 %v207_v8, %v205_v9 }
  0x27   : > { %v209_v12 = vadd.f32 %v208_v11, %v206_v10 }
  0x29   : > { %v210_v13 = vsub.f32 0.0, %v209_v12 }
  0x2a PF: > { %p413_p7 = scmp.ne.s32.totalorder %s501_s9, 0 }
  0x2b   : > { %v222_v15 = vrot.slane (!%p413_p7), %v210_v13, 4  ;;  %v221_v20 = vld [vmem:[#allocation2] sm:$0x1] (!%p413_p7) }
  0x2c   : > { %220 = sbr.rel (%p413_p7) target bundleno = 58 (0x3a), region = 36 }
  0x2d   : > { %v223_v16 = vadd.f32 (!%p413_p7), %v222_v15, %v210_v13 }
  0x2f   : > { %v224_v17 = vrot.slane (!%p413_p7), %v223_v16, 2 }
  0x31   : > { %v225_v18 = vadd.f32 (!%p413_p7), %v224_v17, %v223_v16 }
  0x33   : > { %v226_v19 = vrot.slane %v225_v18, 1 }
  0x35   : > { %v227_v21 = vadd.f32 %v226_v19, %v225_v18 }
  0x37   : > { %v228_v22 = vadd.f32 %v227_v21, %v221_v20 }
  0x39   : > { %229 = vst [vmem:[#allocation2] sm:$0x1] %v228_v22 }
  0x3a PF: > { %231 = sbr.rel (!%p211_p6) target bundleno = 274 (0x112), region = 40  ;;  %vm233_vm0 = vcmask (%p211_p6), 1040384   ;;  %v520_v25 = vmov (%p211_p6), 0.0  }
  0x3b   : > { %250 = vst [vmem:[#allocation4] sm:$0x1] (%p211_p6), %v520_v25  ;;  %251 = vst [vmem:[#allocation5] sm:$0x1] (%p211_p6), %v520_v25 }
  0x40   : > { %v232_v23 = vld [vmem:[#allocation2] sm:$0x1] (%p211_p6) }
  0x41   : > { %v234_v24 = vsel %vm233_vm0, %v232_v23, 0.0 }
  0x42   : > { %235 = vadd.xlane.f32.xlu0 %v234_v24 }
  0xcf   : > { %v236_v26 = vpop.xlane.xlu0 %235 }
  0xd0   : > { %v237_v27 = vrot.slane %v236_v26, 4 }
  0xd2   : > { %v238_v28 = vadd.f32 %v237_v27, %v236_v26 }
  0xd4   : > { %v239_v29 = vrot.slane %v238_v28, 2 }
  0xd6   : > { %v240_v30 = vadd.f32 %v239_v29, %v238_v28 }
  0xd8   : > { %v241_v31 = vrot.slane %v240_v30, 1 }
  0xda   : > { %v242_v32 = vadd.f32 %v241_v31, %v240_v30 }
  0xdc   : > { %422 = vpush %v242_v32 }
 0x10d   : > { %s423_s26 = spop %422 }
 0x10e   : > { %s246_s27 = smul.f32 0.0009765625, %s423_s26 }
 0x110   : > { %v247_v33 = vstv %s246_s27 }
 0x111   : > { %249 = vst [vmem:[#allocation3] sm:$0x1] %v247_v33 }
 0x112 PF: > { %p252_p8 = scmp.eq.s32.totalorder %s501_s9, 1  ;;  %p414_p9 = scmp.ne.s32.totalorder %s501_s9, 1 }
 0x113   : > { %v521_v35 = vmov (!%p414_p9), 0.0   ;;  %v276_v47 = vld [vmem:[#allocation5] sm:$0x1] (!%p414_p9)  ;;  %v266_v50 = vld [vmem:[#allocation4] sm:$0x1] (!%p414_p9) }
 0x114   : > { %255 = sbr.rel (%p414_p9) target bundleno = 300 (0x12c), region = 44 }
 0x118   : > { %v415_v34 = vld [vmem:[#allocation3] ss:$0 sm:$0xff] (!%p414_p9) }
 0x119   : > { %vm263_vm1 = vcmp.gt.f32.partialorder (!%p414_p9), %v210_v13, %v415_v34 }
 0x11a   : > { %v416_v36 = vsel (!%p414_p9), %vm263_vm1, 1.0, %v521_v35 }
 0x11b   : > { %v267_v37 = vmul.f32 %v416_v36, %v210_v13  ;;  %v277_v38 = vrot.slane %v416_v36, 4 }
 0x11d   : > { %v268_v39 = vrot.slane %v267_v37, 4  ;;  %v278_v40 = vadd.f32 %v416_v36, %v277_v38 }
 0x11f   : > { %v269_v41 = vadd.f32 %v268_v39, %v267_v37  ;;  %v279_v42 = vrot.slane %v278_v40, 2 }
 0x121   : > { %v270_v43 = vrot.slane %v269_v41, 2  ;;  %v280_v44 = vadd.f32 %v279_v42, %v278_v40 }
 0x123   : > { %v271_v45 = vadd.f32 %v270_v43, %v269_v41  ;;  %v281_v46 = vrot.slane %v280_v44, 1 }
 0x125   : > { %v272_v48 = vrot.slane %v271_v45, 1  ;;  %v282_v49 = vadd.f32 %v281_v46, %v280_v44 }
 0x127   : > { %v273_v51 = vadd.f32 %v272_v48, %v271_v45  ;;  %v283_v52 = vadd.f32 %v282_v49, %v276_v47 }
 0x129   : > { %v274_v53 = vadd.f32 %v273_v51, %v266_v50  ;;  %284 = vst [vmem:[#allocation5] sm:$0x1] %v283_v52 }
 0x12b   : > { %275 = vst [vmem:[#allocation4] sm:$0x1] %v274_v53 }
 0x12c PF: > { %288 = sbr.rel (!%p252_p8) target bundleno = 582 (0x246), region = 48  ;;  %vm290_vm2 = vcmask (%p252_p8), 1040384  }
 0x130   : > { %v301_v55 = vld [vmem:[#allocation5] sm:$0x1] (%p252_p8) }
 0x131   : > { %v302_v57 = vsel (%p252_p8), %vm290_vm2, %v301_v55, 0.0 }
 0x132   : > { %v289_v54 = vld [vmem:[#allocation4] sm:$0x1] (%p252_p8) }
 0x133   : > { %v291_v56 = vsel %vm290_vm2, %v289_v54, 0.0 }
 0x134   : > { %292 = vadd.xlane.f32.xlu0 %v291_v56 }
 0x138   : > { %303 = vadd.xlane.f32.xlu0 %v302_v57 }
 0x1c1   : > { %v293_v58 = vpop.xlane.xlu0 %292 }
 0x1c2   : > { %v294_v59 = vrot.slane %v293_v58, 4 }
 0x1c4   : > { %v295_v60 = vadd.f32 %v294_v59, %v293_v58 }
 0x1c5   : > { %v304_v61 = vpop.xlane.xlu0 %303 }
 0x1c6   : > { %v296_v62 = vrot.slane %v295_v60, 2  ;;  %v305_v63 = vrot.slane %v304_v61, 4 }
 0x1c8   : > { %v306_v0 = vadd.f32 %v305_v63, %v304_v61  ;;  %v297_v1 = vadd.f32 %v296_v62, %v295_v60 }
 0x1ca   : > { %v307_v2 = vrot.slane %v306_v0, 2  ;;  %v298_v3 = vrot.slane %v297_v1, 1 }
 0x1cc   : > { %v308_v4 = vadd.f32 %v307_v2, %v306_v0  ;;  %v299_v5 = vadd.f32 %v298_v3, %v297_v1 }
 0x1ce   : > { %424 = vpush %v299_v5  ;;  %v309_v6 = vrot.slane %v308_v4, 1 }
 0x1d0   : > { %v310_v7 = vadd.f32 %v309_v6, %v308_v4 }
 0x1d2   : > { %426 = vpush %v310_v7 }
 0x1ff   : > { %s425_s28 = spop %424 }
 0x203   : > { %s427_s29 = spop %426 }
 0x204   : > { %v312_v8 = vstv %s427_s29 }
 0x205   : > { %477 = vrcp.f32 %v312_v8 }
 0x20f   : > { %v478_v9 = vpop.eup %477 }
 0x210   : > { %428 = vpush %v478_v9 }
 0x241   : > { %s429_s30 = spop %428 }
 0x242   : > { %s315_s3 = smul.f32 %s429_s30, %s425_s28 }
 0x244   : > { %v316_v10 = vstv %s315_s3 }
 0x245   : > { %318 = vst [vmem:[%s196_s22] sm:$0xff] %v316_v10 }
 0x246 PF: > { %s12_s13 = sadd.s32 1, %s517_s13   ;;  %s616_s9 = smov %s509_s11 }
 0x247   : > { %p9_p10 = scmp.ge.s32.totalorder %s12_s13, 6   ;;  %s617_s10 = smov %s513_s12 }
 0x248   : > { %s618_s11 = smov %s621_s14  ;;  %s619_s12 = smov %s625_s15 }
 0x249   :  { %11 = sbr.rel (!%p9_p10) target bundleno = 3 (0x3), region = 81 }

</bundles_post_ra>
